<compile_context>
chip_gen: v7x
topology: tpu7x:2x2x1
jax: 0.10.0
libtpu: 0.0.40
codegen_flags: <defaults>
</compile_context>

<pallas_src>
import functools

import jax
import jax.numpy as jnp
from jax import lax
from jax.experimental import pallas as pl
from jax.experimental.pallas import tpu as pltpu

NINF = -100.0  # matches the PyTorch module's nINF sentinel


def _softplus(z):
    # numerically stable softplus; maps -inf -> 0 without NaNs
    return jnp.maximum(z, 0.0) + jnp.log1p(jnp.exp(-jnp.abs(z)))


def _twoway_loss_kernel(x_ref, y_ref,
                        sa_ref, sb_ref, cmax_ref,
                        ma_ref, mb_ref, ssum_ref, scnt_ref,
                        *, n_rows, tile_rows, tp, tn, mask_rows, binary_labels):
    j = pl.program_id(1)

    # ---- init the per-core carried state (held in the resident out blocks) --
    @pl.when(j == 0)
    def _init():
        sa_ref[...] = jnp.zeros_like(sa_ref)
        sb_ref[...] = jnp.zeros_like(sb_ref)
        cmax_ref[...] = jnp.full_like(cmax_ref, NINF)
        ma_ref[...] = jnp.full_like(ma_ref, -jnp.inf)
        mb_ref[...] = jnp.full_like(mb_ref, -jnp.inf)
        ssum_ref[...] = jnp.zeros_like(ssum_ref)
        scnt_ref[...] = jnp.zeros_like(scnt_ref)

    x = x_ref[...].astype(jnp.float32)   # (tm, C)
    y = y_ref[...]                       # native dtype (f32 / bf16 / int8 / bool)

    pos = y > 0
    zero = jnp.logical_not(pos) if binary_labels else (y == 0)
    if mask_rows:
        # Tiles may hang over the end of the row range (ragged last tile or a
        # clamped duplicate tile on the second core): mask those rows out of
        # every reduction.
        row0 = (pl.program_id(0) * pl.num_programs(1) + j) * tile_rows
        row = row0 + lax.broadcasted_iota(jnp.int32, (tile_rows, 1), 0)
        valid = row < n_rows
        pos = jnp.logical_and(pos, valid)
        zero = jnp.logical_and(zero, valid)

    # Fused masking; multiply-by-constant instead of divide; Tn==1 is a no-op.
    a_m = jnp.where(pos, x * (-1.0 / tp), NINF)
    b_m = jnp.where(zero, x if tn == 1.0 else x * (1.0 / tn), NINF)

    # Maxes of the masked array double as "has a positive" indicators.
    col_max_a = jnp.max(a_m, axis=0, keepdims=True)        # (1, C)
    row_max_a = jnp.max(a_m, axis=1, keepdims=True)        # (tm, 1)
    tile_max_a = jnp.max(row_max_a, axis=0, keepdims=True)               # (1, 1)
    tile_max_b = jnp.max(jnp.max(b_m, axis=1, keepdims=True),
                         axis=0, keepdims=True)                          # (1, 1)

    # ---- shared-shift online LSE carry for the class axis (axis=0) ---------
    m_a_old = ma_ref[...]
    m_b_old = mb_ref[...]
    m_a_new = jnp.maximum(m_a_old, tile_max_a)
    m_b_new = jnp.maximum(m_b_old, tile_max_b)
    r_a = jnp.exp(m_a_old - m_a_new)
    r_b = jnp.exp(m_b_old - m_b_new)

    # Only TWO full-size transcendentals per tile.
    e_a = jnp.exp(a_m - m_a_new)
    e_b = jnp.exp(b_m - m_b_new)

    sa_ref[...] = sa_ref[...] * r_a + jnp.sum(e_a, axis=0, keepdims=True)
    sb_ref[...] = sb_ref[...] * r_b + jnp.sum(e_b, axis=0, keepdims=True)
    cmax_ref[...] = jnp.maximum(cmax_ref[...], col_max_a)
    ma_ref[...] = m_a_new
    mb_ref[...] = m_b_new

    # ---- per-sample (lane-axis) sums on the XLU -----------------------------
    row_a = jnp.sum(e_a, axis=1, keepdims=True)            # (tm, 1)
    row_b = jnp.sum(e_b, axis=1, keepdims=True)
    plog_s = (m_a_new + jnp.log(row_a)) * tp
    nlog_s = m_b_new + jnp.log(row_b)
    if tn != 1.0:
        nlog_s = nlog_s * tn
    v_s = _softplus(plog_s + nlog_s)
    smask = row_max_a > (NINF + 1.0)                       # row has a positive
    ssum_ref[...] += jnp.sum(jnp.where(smask, v_s, 0.0), axis=0, keepdims=True)
    scnt_ref[...] += jnp.sum(smask.astype(jnp.float32), axis=0, keepdims=True)


def _vmem_limit_bytes():
    """Per-generation scoped-VMEM limit with headroom (v7x: 48 MiB of 64 MiB;
    v5e/v6e: 96 MiB of 128 MiB).  Falls back to the conservative v7x value."""
    try:
        cap = int(pltpu.get_tpu_info().vmem_capacity_bytes)
    except Exception:
        cap = 0
    if cap <= 0:
        cap = 64 * 1024 * 1024
    return min((cap // 4) * 3, 96 * 1024 * 1024)


def twoway_loss(x, y, *, tp=4.0, tn=1.0, block_rows=None, binary_labels=False):
    """TwoWayLoss over logits x (N, C) and multi-label targets y (N, C).

    y may be float32, bfloat16, int8 or bool -- only `y > 0` / `y == 0` are
    used, so narrower label dtypes (and bf16 x) cut HBM traffic.  Set
    binary_labels=True when y is guaranteed {0, 1} to skip the second
    full-tile label compare.
    """
    n, c = x.shape
    assert y.shape == (n, c) and n > 0 and c > 0

    vmem_limit = _vmem_limit_bytes()

    if block_rows is None:
        # Per-row VMEM footprint: 2 pipeline buffers x (x + y bytes), plus
        # ~5 f32 (tm, C) in-kernel temporaries (a_m, b_m, e_a, e_b, upcast x /
        # masks).  Use half the scoped limit as the budget for headroom.
        budget = vmem_limit // 2
        temps = 20 + (0 if x.dtype == jnp.float32 else 4)
        per_row = 2 * c * (x.dtype.itemsize + y.dtype.itemsize) + temps * c
        tm = (budget // per_row) // 8 * 8
        tm = max(8, min(1024, int(tm)))
    else:
        tm = int(block_rows)
    if tm >= n:
        tm = n                        # single tile: full-dim block is always legal
    else:
        tm = max(8, (tm // 8) * 8)    # honor the (8, 128) sublane rule

    n_tiles = pl.cdiv(n, tm)
    ncore = min(2, n_tiles)           # v7x has 2 TensorCores; harmless elsewhere
    inner = pl.cdiv(n_tiles, ncore)
    last_tile = n_tiles - 1
    mask_rows = (ncore * inner * tm != n)

    def xy_map(i, j):
        # Clamp so the (at most one) overhanging tile re-reads the last valid
        # block; its rows are masked out inside the kernel.
        return (jnp.minimum(i * inner + j, last_tile), 0)

    kernel = functools.partial(
        _twoway_loss_kernel, n_rows=n, tile_rows=tm, tp=float(tp), tn=float(tn),
        mask_rows=mask_rows, binary_labels=binary_labels)

    part_spec = pl.BlockSpec((None, 1, c), lambda i, j: (i, 0, 0))
    scal_spec = pl.BlockSpec((None, 1, 1), lambda i, j: (i, 0, 0))

    cost = pl.CostEstimate(
        flops=int(14 * n * c),
        transcendentals=int(2 * n * c + 6 * n),
        bytes_accessed=int(n * c * (x.dtype.itemsize + y.dtype.itemsize)
                           + ncore * (3 * c + 4) * 4),
    )

    sa, sb, cmax, m_a_p, m_b_p, ssum_p, scnt_p = pl.pallas_call(
        kernel,
        out_shape=(
            jax.ShapeDtypeStruct((ncore, 1, c), jnp.float32),  # class sums (pos)
            jax.ShapeDtypeStruct((ncore, 1, c), jnp.float32),  # class sums (neg)
            jax.ShapeDtypeStruct((ncore, 1, c), jnp.float32),  # per-class max(a_m)
            jax.ShapeDtypeStruct((ncore, 1, 1), jnp.float32),  # running shift m_a
            jax.ShapeDtypeStruct((ncore, 1, 1), jnp.float32),  # running shift m_b
            jax.ShapeDtypeStruct((ncore, 1, 1), jnp.float32),  # sample softplus sum
            jax.ShapeDtypeStruct((ncore, 1, 1), jnp.float32),  # sample count
        ),
        grid=(ncore, inner),
        in_specs=[pl.BlockSpec((tm, c), xy_map),
                  pl.BlockSpec((tm, c), xy_map)],
        out_specs=(part_spec, part_spec, part_spec,
                   scal_spec, scal_spec, scal_spec, scal_spec),
        compiler_params=pltpu.CompilerParams(
            dimension_semantics=("parallel", "arbitrary"),
            vmem_limit_bytes=int(vmem_limit),
        ),
        cost_estimate=cost,
    )(x, y)

    # ---- tiny JAX epilogue: merge the per-core partials ---------------------
    sa = sa[:, 0, :]                    # (ncore, C)
    sb = sb[:, 0, :]
    cmax = cmax[:, 0, :]
    m_a_p = m_a_p[:, 0, 0]              # (ncore,)
    m_b_p = m_b_p[:, 0, 0]

    m_a = jnp.max(m_a_p)
    m_b = jnp.max(m_b_p)
    s_a = jnp.sum(sa * jnp.exp(m_a_p - m_a)[:, None], axis=0)   # (C,)
    s_b = jnp.sum(sb * jnp.exp(m_b_p - m_b)[:, None], axis=0)
    cls = jnp.max(cmax, axis=0) > (NINF + 1.0)                  # class has a positive

    plog_c = (m_a + jnp.log(s_a)) * tp
    nlog_c = m_b + jnp.log(s_b)
    if tn != 1.0:
        nlog_c = nlog_c * tn
    v_c = _softplus(plog_c + nlog_c)
    class_term = (jnp.sum(jnp.where(cls, v_c, 0.0))
                  / jnp.sum(cls).astype(jnp.float32))
    sample_term = jnp.sum(ssum_p) / jnp.sum(scnt_p)
    return class_term + sample_term


def twoway_loss_ref(x, y, tp=4.0, tn=1.0):
    """Pure-JAX reference mirroring the PyTorch forward exactly."""
    pos = y > 0
    class_mask = jnp.any(pos, axis=0)
    sample_mask = jnp.any(pos, axis=1)
    pmask = jnp.where(pos, 0.0, NINF)
    nmask = jnp.where(y == 0, 0.0, NINF)
    plog_c = jax.nn.logsumexp(-x / tp + pmask, axis=0) * tp
    plog_s = jax.nn.logsumexp(-x / tp + pmask, axis=1) * tp
    nlog_c = jax.nn.logsumexp(x / tn + nmask, axis=0) * tn
    nlog_s = jax.nn.logsumexp(x / tn + nmask, axis=1) * tn
    sp = jax.nn.softplus
    mc = jnp.sum(jnp.where(class_mask, sp(nlog_c + plog_c), 0.0)) / jnp.sum(class_mask)
    ms = jnp.sum(jnp.where(sample_mask, sp(nlog_s + plog_s), 0.0)) / jnp.sum(sample_mask)
    return mc + ms


if __name__ == "__main__":
    N, C = 40, 128   # samples x classes (small, but exercises a multi-step grid)
    key = jax.random.PRNGKey(0)
    kx, ky = jax.random.split(key)
    x = jax.random.normal(kx, (N, C), dtype=jnp.float32)
    y = jax.random.bernoulli(ky, p=0.3, shape=(N, C)).astype(jnp.float32)  # {0,1}

    ref = twoway_loss_ref(x, y)

    # Multi-tile path: 3 row tiles split over the (2, inner) grid -> exercises
    # the online-LSE carry, ragged/clamped-tile masking and the partial-merge
    # epilogue.
    loss_tiled = twoway_loss(x, y, block_rows=16)
    jax.block_until_ready(loss_tiled)
    assert jnp.allclose(loss_tiled, ref, rtol=1e-4, atol=1e-4), (loss_tiled, ref)

    # Automatic tile size (single tile here).
    loss_auto = twoway_loss(x, y)
    jax.block_until_ready(loss_auto)
    assert jnp.allclose(loss_auto, ref, rtol=1e-4, atol=1e-4), (loss_auto, ref)

    # Reduced-HBM-bytes path: bf16 logits + int8 {0,1} labels + binary fast path.
    x_bf = x.astype(jnp.bfloat16)
    y_i8 = y.astype(jnp.int8)
    ref_bf = twoway_loss_ref(x_bf.astype(jnp.float32), y)
    loss_lp = twoway_loss(x_bf, y_i8, block_rows=16, binary_labels=True)
    jax.block_until_ready(loss_lp)
    assert jnp.allclose(loss_lp, ref_bf, rtol=1e-3, atol=1e-3), (loss_lp, ref_bf)

    print("KERNEL_OK")
</pallas_src>

<mosaic_0001>
module attributes {stable_mosaic.version = 11 : i64} {
  func.func @_twoway_loss_kernel(%arg0: i32, %arg1: i32, %arg2: memref<16x128xf32, #tpu.memory_space<vmem>>, %arg3: memref<16x128xf32, #tpu.memory_space<vmem>>, %arg4: memref<1x1x128xf32, #tpu.memory_space<vmem>>, %arg5: memref<1x1x128xf32, #tpu.memory_space<vmem>>, %arg6: memref<1x1x128xf32, #tpu.memory_space<vmem>>, %arg7: memref<1x1x1xf32, #tpu.memory_space<vmem>>, %arg8: memref<1x1x1xf32, #tpu.memory_space<vmem>>, %arg9: memref<1x1x1xf32, #tpu.memory_space<vmem>>, %arg10: memref<1x1x1xf32, #tpu.memory_space<vmem>>) attributes {dimension_semantics = [#tpu.dimension_semantics<parallel>, #tpu.dimension_semantics<arbitrary>], iteration_bounds = array<i64: 2, 2>, scalar_prefetch = 0 : i64, scratch_operands = 0 : i64, tpu.core_type = #tpu.core_type<tc>, window_params = [{transform_indices = @transform_0, window_bounds = array<i64: 16, 128>}, {transform_indices = @transform_1, window_bounds = array<i64: 16, 128>}, {transform_indices = @transform_2, window_bounds = array<i64: 1, 1, 128>}, {transform_indices = @transform_3, window_bounds = array<i64: 1, 1, 128>}, {transform_indices = @transform_4, window_bounds = array<i64: 1, 1, 128>}, {transform_indices = @transform_5, window_bounds = array<i64: 1, 1, 1>}, {transform_indices = @transform_6, window_bounds = array<i64: 1, 1, 1>}, {transform_indices = @transform_7, window_bounds = array<i64: 1, 1, 1>}, {transform_indices = @transform_8, window_bounds = array<i64: 1, 1, 1>}]} {
    %c0_i32 = arith.constant 0 : i32
    %0 = arith.cmpi eq, %arg1, %c0_i32 : i32
    %1 = arith.extui %0 : i1 to i32
    %c0_i32_0 = arith.constant 0 : i32
    %2 = arith.cmpi ne, %1, %c0_i32_0 : i32
    scf.if %2 {
      %cst_66 = arith.constant 0.000000e+00 : f32
      %128 = vector.broadcast %cst_66 : f32 to vector<1x128xf32>
      %c0_67 = arith.constant 0 : index
      %c0_68 = arith.constant 0 : index
      %c0_69 = arith.constant 0 : index
      %129 = vector.load %arg4[%c0_67, %c0_68, %c0_69] : memref<1x1x128xf32, #tpu.memory_space<vmem>>, vector<1x1x128xf32>
      %130 = vector.shape_cast %129 : vector<1x1x128xf32> to vector<1x128xf32>
      %131 = vector.shape_cast %128 : vector<1x128xf32> to vector<1x1x128xf32>
      tpu.vector_store %arg4[%c0_67, %c0_68, %c0_69], %131 {strides = array<i32>} : memref<1x1x128xf32, #tpu.memory_space<vmem>>, vector<1x1x128xf32>,
      %cst_70 = arith.constant 0.000000e+00 : f32
      %132 = vector.broadcast %cst_70 : f32 to vector<1x128xf32>
      %c0_71 = arith.constant 0 : index
      %c0_72 = arith.constant 0 : index
      %c0_73 = arith.constant 0 : index
      %133 = vector.load %arg5[%c0_71, %c0_72, %c0_73] : memref<1x1x128xf32, #tpu.memory_space<vmem>>, vector<1x1x128xf32>
      %134 = vector.shape_cast %133 : vector<1x1x128xf32> to vector<1x128xf32>
      %135 = vector.shape_cast %132 : vector<1x128xf32> to vector<1x1x128xf32>
      tpu.vector_store %arg5[%c0_71, %c0_72, %c0_73], %135 {strides = array<i32>} : memref<1x1x128xf32, #tpu.memory_space<vmem>>, vector<1x1x128xf32>,
      %cst_74 = arith.constant -1.000000e+02 : f32
      %136 = vector.broadcast %cst_74 : f32 to vector<1x128xf32>
      %c0_75 = arith.constant 0 : index
      %c0_76 = arith.constant 0 : index
      %c0_77 = arith.constant 0 : index
      %137 = vector.load %arg6[%c0_75, %c0_76, %c0_77] : memref<1x1x128xf32, #tpu.memory_space<vmem>>, vector<1x1x128xf32>
      %138 = vector.shape_cast %137 : vector<1x1x128xf32> to vector<1x128xf32>
      %139 = vector.shape_cast %136 : vector<1x128xf32> to vector<1x1x128xf32>
      tpu.vector_store %arg6[%c0_75, %c0_76, %c0_77], %139 {strides = array<i32>} : memref<1x1x128xf32, #tpu.memory_space<vmem>>, vector<1x1x128xf32>,
      %cst_78 = arith.constant 0xFF800000 : f32
      %140 = vector.broadcast %cst_78 : f32 to vector<1x1xf32>
      %c0_79 = arith.constant 0 : index
      %c0_80 = arith.constant 0 : index
      %c0_81 = arith.constant 0 : index
      %141 = vector.load %arg7[%c0_79, %c0_80, %c0_81] : memref<1x1x1xf32, #tpu.memory_space<vmem>>, vector<1x1x1xf32>
      %142 = vector.shape_cast %141 : vector<1x1x1xf32> to vector<1x1xf32>
      %143 = vector.shape_cast %140 : vector<1x1xf32> to vector<1x1x1xf32>
      tpu.vector_store %arg7[%c0_79, %c0_80, %c0_81], %143 {strides = array<i32>} : memref<1x1x1xf32, #tpu.memory_space<vmem>>, vector<1x1x1xf32>,
      %cst_82 = arith.constant 0xFF800000 : f32
      %144 = vector.broadcast %cst_82 : f32 to vector<1x1xf32>
      %c0_83 = arith.constant 0 : index
      %c0_84 = arith.constant 0 : index
      %c0_85 = arith.constant 0 : index
      %145 = vector.load %arg8[%c0_83, %c0_84, %c0_85] : memref<1x1x1xf32, #tpu.memory_space<vmem>>, vector<1x1x1xf32>
      %146 = vector.shape_cast %145 : vector<1x1x1xf32> to vector<1x1xf32>
      %147 = vector.shape_cast %144 : vector<1x1xf32> to vector<1x1x1xf32>
      tpu.vector_store %arg8[%c0_83, %c0_84, %c0_85], %147 {strides = array<i32>} : memref<1x1x1xf32, #tpu.memory_space<vmem>>, vector<1x1x1xf32>,
      %cst_86 = arith.constant 0.000000e+00 : f32
      %148 = vector.broadcast %cst_86 : f32 to vector<1x1xf32>
      %c0_87 = arith.constant 0 : index
      %c0_88 = arith.constant 0 : index
      %c0_89 = arith.constant 0 : index
      %149 = vector.load %arg9[%c0_87, %c0_88, %c0_89] : memref<1x1x1xf32, #tpu.memory_space<vmem>>, vector<1x1x1xf32>
      %150 = vector.shape_cast %149 : vector<1x1x1xf32> to vector<1x1xf32>
      %151 = vector.shape_cast %148 : vector<1x1xf32> to vector<1x1x1xf32>
      tpu.vector_store %arg9[%c0_87, %c0_88, %c0_89], %151 {strides = array<i32>} : memref<1x1x1xf32, #tpu.memory_space<vmem>>, vector<1x1x1xf32>,
      %cst_90 = arith.constant 0.000000e+00 : f32
      %152 = vector.broadcast %cst_90 : f32 to vector<1x1xf32>
      %c0_91 = arith.constant 0 : index
      %c0_92 = arith.constant 0 : index
      %c0_93 = arith.constant 0 : index
      %153 = vector.load %arg10[%c0_91, %c0_92, %c0_93] : memref<1x1x1xf32, #tpu.memory_space<vmem>>, vector<1x1x1xf32>
      %154 = vector.shape_cast %153 : vector<1x1x1xf32> to vector<1x1xf32>
      %155 = vector.shape_cast %152 : vector<1x1xf32> to vector<1x1x1xf32>
      tpu.vector_store %arg10[%c0_91, %c0_92, %c0_93], %155 {strides = array<i32>} : memref<1x1x1xf32, #tpu.memory_space<vmem>>, vector<1x1x1xf32>,
    } else {
    }
    %c0 = arith.constant 0 : index
    %c0_1 = arith.constant 0 : index
    %3 = vector.load %arg2[%c0, %c0_1] : memref<16x128xf32, #tpu.memory_space<vmem>>, vector<16x128xf32>
    %c0_2 = arith.constant 0 : index
    %c0_3 = arith.constant 0 : index
    %4 = vector.load %arg3[%c0_2, %c0_3] : memref<16x128xf32, #tpu.memory_space<vmem>>, vector<16x128xf32>
    %cst = arith.constant 0.000000e+00 : f32
    %5 = vector.broadcast %cst : f32 to vector<16x128xf32>
    %6 = arith.cmpf ogt, %4, %5 : vector<16x128xf32>
    %cst_4 = arith.constant 0.000000e+00 : f32
    %7 = vector.broadcast %cst_4 : f32 to vector<16x128xf32>
    %8 = arith.cmpf oeq, %4, %7 : vector<16x128xf32>
    %c2_i32 = arith.constant 2 : i32
    %9 = arith.muli %arg0, %c2_i32 : i32
    %10 = arith.addi %9, %arg1 : i32
    %c16_i32 = arith.constant 16 : i32
    %11 = arith.muli %10, %c16_i32 : i32
    %12 = tpu.iota {dimensions = array<i32: 0>} : vector<16x1xi32>
    %13 = vector.broadcast %11 : i32 to vector<16x1xi32>
    %14 = arith.addi %13, %12 : vector<16x1xi32>
    %c40_i32 = arith.constant 40 : i32
    %15 = vector.broadcast %c40_i32 : i32 to vector<16x1xi32>
    %16 = arith.cmpi slt, %14, %15 : vector<16x1xi32>
    %17 = vector.broadcast %16 : vector<16x1xi1> to vector<16x128xi1>
    %18 = arith.andi %6, %17 : vector<16x128xi1>
    %19 = vector.broadcast %16 : vector<16x1xi1> to vector<16x128xi1>
    %20 = arith.andi %8, %19 : vector<16x128xi1>
    %cst_5 = arith.constant -2.500000e-01 : f32
    %21 = vector.broadcast %cst_5 : f32 to vector<16x128xf32>
    %22 = arith.mulf %3, %21 : vector<16x128xf32>
    %cst_6 = arith.constant -1.000000e+02 : f32
    %23 = vector.broadcast %cst_6 : f32 to vector<16x128xf32>
    %24 = arith.select %18, %22, %23 : vector<16x128xi1>, vector<16x128xf32>
    %cst_7 = arith.constant -1.000000e+02 : f32
    %25 = vector.broadcast %cst_7 : f32 to vector<16x128xf32>
    %26 = arith.select %20, %3, %25 : vector<16x128xi1>, vector<16x128xf32>
    %cst_8 = arith.constant dense<0xFF800000> : vector<128xf32>
    %27 = vector.multi_reduction <maximumf>, %24, %cst_8 [0] : vector<16x128xf32> to vector<128xf32>
    %28 = vector.shape_cast %27 : vector<128xf32> to vector<1x128xf32>
    %cst_9 = arith.constant dense<0xFF800000> : vector<16xf32>
    %29 = vector.multi_reduction <maximumf>, %24, %cst_9 [1] : vector<16x128xf32> to vector<16xf32>
    %30 = vector.shape_cast %29 : vector<16xf32> to vector<16x1xf32>
    %cst_10 = arith.constant dense<0xFF800000> : vector<1xf32>
    %31 = vector.multi_reduction <maximumf>, %30, %cst_10 [0] : vector<16x1xf32> to vector<1xf32>
    %32 = vector.shape_cast %31 : vector<1xf32> to vector<1x1xf32>
    %cst_11 = arith.constant dense<0xFF800000> : vector<16xf32>
    %33 = vector.multi_reduction <maximumf>, %26, %cst_11 [1] : vector<16x128xf32> to vector<16xf32>
    %34 = vector.shape_cast %33 : vector<16xf32> to vector<16x1xf32>
    %cst_12 = arith.constant dense<0xFF800000> : vector<1xf32>
    %35 = vector.multi_reduction <maximumf>, %34, %cst_12 [0] : vector<16x1xf32> to vector<1xf32>
    %36 = vector.shape_cast %35 : vector<1xf32> to vector<1x1xf32>
    %c0_13 = arith.constant 0 : index
    %c0_14 = arith.constant 0 : index
    %c0_15 = arith.constant 0 : index
    %37 = vector.load %arg7[%c0_13, %c0_14, %c0_15] : memref<1x1x1xf32, #tpu.memory_space<vmem>>, vector<1x1x1xf32>
    %38 = vector.shape_cast %37 : vector<1x1x1xf32> to vector<1x1xf32>
    %c0_16 = arith.constant 0 : index
    %c0_17 = arith.constant 0 : index
    %c0_18 = arith.constant 0 : index
    %39 = vector.load %arg8[%c0_16, %c0_17, %c0_18] : memref<1x1x1xf32, #tpu.memory_space<vmem>>, vector<1x1x1xf32>
    %40 = vector.shape_cast %39 : vector<1x1x1xf32> to vector<1x1xf32>
    %41 = arith.maximumf %38, %32 : vector<1x1xf32>
    %42 = arith.maximumf %40, %36 : vector<1x1xf32>
    %43 = arith.subf %38, %41 : vector<1x1xf32>
    %44 = math.exp %43 : vector<1x1xf32>
    %45 = arith.subf %40, %42 : vector<1x1xf32>
    %46 = math.exp %45 : vector<1x1xf32>
    %47 = vector.broadcast %41 : vector<1x1xf32> to vector<16x128xf32>
    %48 = arith.subf %24, %47 : vector<16x128xf32>
    %49 = math.exp %48 : vector<16x128xf32>
    %50 = vector.broadcast %42 : vector<1x1xf32> to vector<16x128xf32>
    %51 = arith.subf %26, %50 : vector<16x128xf32>
    %52 = math.exp %51 : vector<16x128xf32>
    %c0_19 = arith.constant 0 : index
    %c0_20 = arith.constant 0 : index
    %c0_21 = arith.constant 0 : index
    %53 = vector.load %arg4[%c0_19, %c0_20, %c0_21] : memref<1x1x128xf32, #tpu.memory_space<vmem>>, vector<1x1x128xf32>
    %54 = vector.shape_cast %53 : vector<1x1x128xf32> to vector<1x128xf32>
    %55 = vector.broadcast %44 : vector<1x1xf32> to vector<1x128xf32>
    %56 = arith.mulf %54, %55 : vector<1x128xf32>
    %cst_22 = arith.constant dense<0.000000e+00> : vector<128xf32>
    %57 = vector.multi_reduction <add>, %49, %cst_22 [0] : vector<16x128xf32> to vector<128xf32>
    %58 = vector.shape_cast %57 : vector<128xf32> to vector<1x128xf32>
    %59 = arith.addf %56, %58 : vector<1x128xf32>
    %c0_23 = arith.constant 0 : index
    %c0_24 = arith.constant 0 : index
    %c0_25 = arith.constant 0 : index
    %60 = vector.load %arg4[%c0_23, %c0_24, %c0_25] : memref<1x1x128xf32, #tpu.memory_space<vmem>>, vector<1x1x128xf32>
    %61 = vector.shape_cast %60 : vector<1x1x128xf32> to vector<1x128xf32>
    %62 = vector.shape_cast %59 : vector<1x128xf32> to vector<1x1x128xf32>
    tpu.vector_store %arg4[%c0_23, %c0_24, %c0_25], %62 {strides = array<i32>} : memref<1x1x128xf32, #tpu.memory_space<vmem>>, vector<1x1x128xf32>,
    %c0_26 = arith.constant 0 : index
    %c0_27 = arith.constant 0 : index
    %c0_28 = arith.constant 0 : index
    %63 = vector.load %arg5[%c0_26, %c0_27, %c0_28] : memref<1x1x128xf32, #tpu.memory_space<vmem>>, vector<1x1x128xf32>
    %64 = vector.shape_cast %63 : vector<1x1x128xf32> to vector<1x128xf32>
    %65 = vector.broadcast %46 : vector<1x1xf32> to vector<1x128xf32>
    %66 = arith.mulf %64, %65 : vector<1x128xf32>
    %cst_29 = arith.constant dense<0.000000e+00> : vector<128xf32>
    %67 = vector.multi_reduction <add>, %52, %cst_29 [0] : vector<16x128xf32> to vector<128xf32>
    %68 = vector.shape_cast %67 : vector<128xf32> to vector<1x128xf32>
    %69 = arith.addf %66, %68 : vector<1x128xf32>
    %c0_30 = arith.constant 0 : index
    %c0_31 = arith.constant 0 : index
    %c0_32 = arith.constant 0 : index
    %70 = vector.load %arg5[%c0_30, %c0_31, %c0_32] : memref<1x1x128xf32, #tpu.memory_space<vmem>>, vector<1x1x128xf32>
    %71 = vector.shape_cast %70 : vector<1x1x128xf32> to vector<1x128xf32>
    %72 = vector.shape_cast %69 : vector<1x128xf32> to vector<1x1x128xf32>
    tpu.vector_store %arg5[%c0_30, %c0_31, %c0_32], %72 {strides = array<i32>} : memref<1x1x128xf32, #tpu.memory_space<vmem>>, vector<1x1x128xf32>,
    %c0_33 = arith.constant 0 : index
    %c0_34 = arith.constant 0 : index
    %c0_35 = arith.constant 0 : index
    %73 = vector.load %arg6[%c0_33, %c0_34, %c0_35] : memref<1x1x128xf32, #tpu.memory_space<vmem>>, vector<1x1x128xf32>
    %74 = vector.shape_cast %73 : vector<1x1x128xf32> to vector<1x128xf32>
    %75 = arith.maximumf %74, %28 : vector<1x128xf32>
    %c0_36 = arith.constant 0 : index
    %c0_37 = arith.constant 0 : index
    %c0_38 = arith.constant 0 : index
    %76 = vector.load %arg6[%c0_36, %c0_37, %c0_38] : memref<1x1x128xf32, #tpu.memory_space<vmem>>, vector<1x1x128xf32>
    %77 = vector.shape_cast %76 : vector<1x1x128xf32> to vector<1x128xf32>
    %78 = vector.shape_cast %75 : vector<1x128xf32> to vector<1x1x128xf32>
    tpu.vector_store %arg6[%c0_36, %c0_37, %c0_38], %78 {strides = array<i32>} : memref<1x1x128xf32, #tpu.memory_space<vmem>>, vector<1x1x128xf32>,
    %c0_39 = arith.constant 0 : index
    %c0_40 = arith.constant 0 : index
    %c0_41 = arith.constant 0 : index
    %79 = vector.load %arg7[%c0_39, %c0_40, %c0_41] : memref<1x1x1xf32, #tpu.memory_space<vmem>>, vector<1x1x1xf32>
    %80 = vector.shape_cast %79 : vector<1x1x1xf32> to vector<1x1xf32>
    %81 = vector.shape_cast %41 : vector<1x1xf32> to vector<1x1x1xf32>
    tpu.vector_store %arg7[%c0_39, %c0_40, %c0_41], %81 {strides = array<i32>} : memref<1x1x1xf32, #tpu.memory_space<vmem>>, vector<1x1x1xf32>,
    %c0_42 = arith.constant 0 : index
    %c0_43 = arith.constant 0 : index
    %c0_44 = arith.constant 0 : index
    %82 = vector.load %arg8[%c0_42, %c0_43, %c0_44] : memref<1x1x1xf32, #tpu.memory_space<vmem>>, vector<1x1x1xf32>
    %83 = vector.shape_cast %82 : vector<1x1x1xf32> to vector<1x1xf32>
    %84 = vector.shape_cast %42 : vector<1x1xf32> to vector<1x1x1xf32>
    tpu.vector_store %arg8[%c0_42, %c0_43, %c0_44], %84 {strides = array<i32>} : memref<1x1x1xf32, #tpu.memory_space<vmem>>, vector<1x1x1xf32>,
    %cst_45 = arith.constant dense<0.000000e+00> : vector<16xf32>
    %85 = vector.multi_reduction <add>, %49, %cst_45 [1] : vector<16x128xf32> to vector<16xf32>
    %86 = vector.shape_cast %85 : vector<16xf32> to vector<16x1xf32>
    %cst_46 = arith.constant dense<0.000000e+00> : vector<16xf32>
    %87 = vector.multi_reduction <add>, %52, %cst_46 [1] : vector<16x128xf32> to vector<16xf32>
    %88 = vector.shape_cast %87 : vector<16xf32> to vector<16x1xf32>
    %89 = math.log %86 : vector<16x1xf32>
    %90 = vector.broadcast %41 : vector<1x1xf32> to vector<16x1xf32>
    %91 = arith.addf %90, %89 : vector<16x1xf32>
    %cst_47 = arith.constant 4.000000e+00 : f32
    %92 = vector.broadcast %cst_47 : f32 to vector<16x1xf32>
    %93 = arith.mulf %91, %92 : vector<16x1xf32>
    %94 = math.log %88 : vector<16x1xf32>
    %95 = vector.broadcast %42 : vector<1x1xf32> to vector<16x1xf32>
    %96 = arith.addf %95, %94 : vector<16x1xf32>
    %97 = arith.addf %93, %96 : vector<16x1xf32>
    %cst_48 = arith.constant 0.000000e+00 : f32
    %98 = vector.broadcast %cst_48 : f32 to vector<16x1xf32>
    %99 = arith.maximumf %97, %98 : vector<16x1xf32>
    %100 = math.absf %97 : vector<16x1xf32>
    %cst_49 = arith.constant 0.000000e+00 : f32
    %101 = vector.broadcast %cst_49 : f32 to vector<16x1xf32>
    %102 = arith.subf %101, %100 : vector<16x1xf32>
    %103 = math.exp %102 : vector<16x1xf32>
    %104 = math.log1p %103 : vector<16x1xf32>
    %105 = arith.addf %99, %104 : vector<16x1xf32>
    %cst_50 = arith.constant -9.900000e+01 : f32
    %106 = vector.broadcast %cst_50 : f32 to vector<16x1xf32>
    %107 = arith.cmpf ogt, %30, %106 : vector<16x1xf32>
    %c0_51 = arith.constant 0 : index
    %c0_52 = arith.constant 0 : index
    %c0_53 = arith.constant 0 : index
    %108 = vector.load %arg9[%c0_51, %c0_52, %c0_53] : memref<1x1x1xf32, #tpu.memory_space<vmem>>, vector<1x1x1xf32>
    %109 = vector.shape_cast %108 : vector<1x1x1xf32> to vector<1x1xf32>
    %cst_54 = arith.constant 0.000000e+00 : f32
    %110 = vector.broadcast %cst_54 : f32 to vector<16x1xf32>
    %111 = arith.select %107, %105, %110 : vector<16x1xi1>, vector<16x1xf32>
    %cst_55 = arith.constant dense<0.000000e+00> : vector<1xf32>
    %112 = vector.multi_reduction <add>, %111, %cst_55 [0] : vector<16x1xf32> to vector<1xf32>
    %113 = vector.shape_cast %112 : vector<1xf32> to vector<1x1xf32>
    %114 = arith.addf %109, %113 : vector<1x1xf32>
    %c0_56 = arith.constant 0 : index
    %c0_57 = arith.constant 0 : index
    %c0_58 = arith.constant 0 : index
    %115 = vector.load %arg9[%c0_56, %c0_57, %c0_58] : memref<1x1x1xf32, #tpu.memory_space<vmem>>, vector<1x1x1xf32>
    %116 = vector.shape_cast %115 : vector<1x1x1xf32> to vector<1x1xf32>
    %117 = vector.shape_cast %114 : vector<1x1xf32> to vector<1x1x1xf32>
    tpu.vector_store %arg9[%c0_56, %c0_57, %c0_58], %117 {strides = array<i32>} : memref<1x1x1xf32, #tpu.memory_space<vmem>>, vector<1x1x1xf32>,
    %c0_59 = arith.constant 0 : index
    %c0_60 = arith.constant 0 : index
    %c0_61 = arith.constant 0 : index
    %118 = vector.load %arg10[%c0_59, %c0_60, %c0_61] : memref<1x1x1xf32, #tpu.memory_space<vmem>>, vector<1x1x1xf32>
    %119 = vector.shape_cast %118 : vector<1x1x1xf32> to vector<1x1xf32>
    %120 = arith.extui %107 : vector<16x1xi1> to vector<16x1xi32>
    %121 = arith.sitofp %120 : vector<16x1xi32> to vector<16x1xf32>
    %cst_62 = arith.constant dense<0.000000e+00> : vector<1xf32>
    %122 = vector.multi_reduction <add>, %121, %cst_62 [0] : vector<16x1xf32> to vector<1xf32>
    %123 = vector.shape_cast %122 : vector<1xf32> to vector<1x1xf32>
    %124 = arith.addf %119, %123 : vector<1x1xf32>
    %c0_63 = arith.constant 0 : index
    %c0_64 = arith.constant 0 : index
    %c0_65 = arith.constant 0 : index
    %125 = vector.load %arg10[%c0_63, %c0_64, %c0_65] : memref<1x1x1xf32, #tpu.memory_space<vmem>>, vector<1x1x1xf32>
    %126 = vector.shape_cast %125 : vector<1x1x1xf32> to vector<1x1xf32>
    %127 = vector.shape_cast %124 : vector<1x1xf32> to vector<1x1x1xf32>
    tpu.vector_store %arg10[%c0_63, %c0_64, %c0_65], %127 {strides = array<i32>} : memref<1x1x1xf32, #tpu.memory_space<vmem>>, vector<1x1x1xf32>,
    return
  }
  func.func @transform_0(%arg0: i32, %arg1: i32) -> (i32, i32) {
    %c2_i32 = arith.constant 2 : i32
    %0 = arith.muli %arg0, %c2_i32 : i32
    %1 = arith.addi %0, %arg1 : i32
    %c2_i32_0 = arith.constant 2 : i32
    %2 = arith.minsi %1, %c2_i32_0 : i32
    %c0_i32 = arith.constant 0 : i32
    %c0_i32_1 = arith.constant 0 : i32
    return %2, %c0_i32 : i32, i32
  }
  func.func @transform_1(%arg0: i32, %arg1: i32) -> (i32, i32) {
    %c2_i32 = arith.constant 2 : i32
    %0 = arith.muli %arg0, %c2_i32 : i32
    %1 = arith.addi %0, %arg1 : i32
    %c2_i32_0 = arith.constant 2 : i32
    %2 = arith.minsi %1, %c2_i32_0 : i32
    %c0_i32 = arith.constant 0 : i32
    %c0_i32_1 = arith.constant 0 : i32
    return %2, %c0_i32 : i32, i32
  }
  func.func @transform_2(%arg0: i32, %arg1: i32) -> (i32, i32, i32) {
    %c0_i32 = arith.constant 0 : i32
    %c0_i32_0 = arith.constant 0 : i32
    %c0_i32_1 = arith.constant 0 : i32
    return %arg0, %c0_i32, %c0_i32_0 : i32, i32, i32
  }
  func.func @transform_3(%arg0: i32, %arg1: i32) -> (i32, i32, i32) {
    %c0_i32 = arith.constant 0 : i32
    %c0_i32_0 = arith.constant 0 : i32
    %c0_i32_1 = arith.constant 0 : i32
    return %arg0, %c0_i32, %c0_i32_0 : i32, i32, i32
  }
  func.func @transform_4(%arg0: i32, %arg1: i32) -> (i32, i32, i32) {
    %c0_i32 = arith.constant 0 : i32
    %c0_i32_0 = arith.constant 0 : i32
    %c0_i32_1 = arith.constant 0 : i32
    return %arg0, %c0_i32, %c0_i32_0 : i32, i32, i32
  }
  func.func @transform_5(%arg0: i32, %arg1: i32) -> (i32, i32, i32) {
    %c0_i32 = arith.constant 0 : i32
    %c0_i32_0 = arith.constant 0 : i32
    %c0_i32_1 = arith.constant 0 : i32
    return %arg0, %c0_i32, %c0_i32_0 : i32, i32, i32
  }
  func.func @transform_6(%arg0: i32, %arg1: i32) -> (i32, i32, i32) {
    %c0_i32 = arith.constant 0 : i32
    %c0_i32_0 = arith.constant 0 : i32
    %c0_i32_1 = arith.constant 0 : i32
    return %arg0, %c0_i32, %c0_i32_0 : i32, i32, i32
  }
  func.func @transform_7(%arg0: i32, %arg1: i32) -> (i32, i32, i32) {
    %c0_i32 = arith.constant 0 : i32
    %c0_i32_0 = arith.constant 0 : i32
    %c0_i32_1 = arith.constant 0 : i32
    return %arg0, %c0_i32, %c0_i32_0 : i32, i32, i32
  }
  func.func @transform_8(%arg0: i32, %arg1: i32) -> (i32, i32, i32) {
    %c0_i32 = arith.constant 0 : i32
    %c0_i32_0 = arith.constant 0 : i32
    %c0_i32_1 = arith.constant 0 : i32
    return %arg0, %c0_i32, %c0_i32_0 : i32, i32, i32
  }
}

</mosaic_0001>

<bundles_post_ra>
// kernel: tpu_custom_call.1
= control target key start
LH: loop header
LB: loop body
LE: loop exit
PB: predicated region body
PF: predicated region fallthrough
CT: control target
= control target key end

     0   :  { %s1986_s0 = inlined_call_operand.hbm [shape: f32[40,128], index: 0, kind: input, shape index: {}]   ;;  %s1987_s1 = inlined_call_operand.hbm [shape: f32[40,128], index: 1, kind: input, shape index: {}]   ;;  %s1988_s2 = inlined_call_operand.hbm [shape: f32[2,1,128], index: 2, kind: output, shape index: {0}]   ;;  %s1989_s3 = inlined_call_operand.hbm [shape: f32[2,1,128], index: 3, kind: output, shape index: {1}]   ;;  %s1990_s4 = inlined_call_operand.hbm [shape: f32[2,1,128], index: 4, kind: output, shape index: {2}]   ;;  %s1991_s5 = inlined_call_operand.vmem [shape: f32[2,1,1], index: 5, kind: output, shape index: {3}]   ;;  %s1992_s6 = inlined_call_operand.vmem [shape: f32[2,1,1], index: 6, kind: output, shape index: {4}]   ;;  %s1993_s7 = inlined_call_operand.vmem [shape: f32[2,1,1], index: 7, kind: output, shape index: {5}]   ;;  %s1994_s8 = inlined_call_operand.vmem [shape: f32[2,1,1], index: 8, kind: output, shape index: {6}]  }
   0x1   :  { %2005 = sst [smem:[#allocation24_spill]] %s1986_s0 }
   0x2   :  { %2006 = sst [smem:[#allocation25_spill]] %s1989_s3 }
   0x3   :  { %2007 = sst [smem:[#allocation26_spill]] %s1990_s4 }
   0x4   :  { %14 = vsyncpa [#allocation3], 0 }
   0x5   :  { %16 = vsyncpa [#allocation3 + $0x1], 0 }
   0x6   :  { %17 = vsyncpa [#allocation6], 0 }
   0x7   :  { %19 = vsyncpa [#allocation6 + $0x1], 0 }
   0x8   :  { %20 = vsyncpa [#allocation4], 0 }
   0x9   :  { %22 = vsyncpa [#allocation4 + $0x1], 0 }
   0xa   :  { %23 = vsyncpa [#allocation9], 0 }
   0xb   :  { %25 = vsyncpa [#allocation9 + $0x1], 0  ;;  %s1512_s27 = smov 0   ;;  %s1514_s28 = smov 0  }
   0xc   :  { %s1516_s29 = smov 0   ;;  %s1518_s30 = smov 0  }
   0xd   :  { %s1520_s9 = smov 0   ;;  %s1522_s10 = smov 0  }
   0xe   :  { %s1524_s11 = smov 0   ;;  %s1526_s12 = smov 0  }
   0xf   :  { %s1528_s13 = smov 0   ;;  %s1530_s14 = smov 0  }
  0x10   :  { %s1532_s15 = smov 0  }
  0x11 LB: > { %2008 = sst [smem:[#allocation15_spill]] %s1411_s27  ;;  %s1568_s16 = sadd.s32 4294967295, %s1451_s15   ;;  %s1451_s15 = sphi %s1532_s15, %s31_s15   ;;  %s1447_s14 = sphi %s1530_s14, %s2039_s14   ;;  %s1443_s13 = sphi %s1528_s13, %s2038_s13   ;;  %s1439_s12 = sphi %s1526_s12, %s2037_s12   ;;  %s1435_s11 = sphi %s1524_s11, %s2036_s11   ;;  %s1431_s10 = sphi %s1522_s10, %s2044_s10   ;;  %s1427_s9 = sphi %s1520_s9, %s2043_s9   ;;  %s1423_s30 = sphi %s1518_s30, %s2042_s30   ;;  %s1419_s29 = sphi %s1516_s29, %s2034_s29   ;;  %s1415_s28 = sphi %s1514_s28, %s2041_s28   ;;  %s1411_s27 = sphi %s1512_s27, %s2040_s27  }
  0x12   : > { %2009 = sst [smem:[#allocation16_spill]] %s1419_s29  ;;  %s40_s18 = sadd.s32 1, %s1443_s13 }
  0x13   : > { %2010 = sst [smem:[#allocation17_spill]] %s1443_s13  ;;  %s43_s19 = sadd.s32 1, %s1447_s14 }
  0x14   : > { %2011 = sst [smem:[#allocation18_spill]] %s1447_s14  ;;  %p41_p0 = scmp.ge.s32.totalorder %s40_s18, 2 }
  0x15   : > { %s1026_s20 = sshll.u32 %s1447_s14, 1  ;;  %s58_s22 = sadd.s32 1, %s1431_s10 }
  0x16   : > { %s48_s21 = sadd.s32 %s1443_s13, %s1026_s20  ;;  %s2046_s18 = smov (%p41_p0, %s40_s18), 0 }
  0x17   : > { %2012 = sst [smem:[#allocation19_spill]] %s2046_s18  ;;  %s2048_s19 = smov (!%p41_p0, %s43_s19), %s1447_s14 }
  0x18   : > { %p49_p1 = scmp.lt.s32.totalorder %s48_s21, 2  ;;  %p65_p2 = scmp.ne.s32.totalorder %s1431_s10, %s1427_s9 }
  0x19   : > { %p45_p3 = scmp.ge.s32.totalorder %s2048_s19, 2  ;;  %p66_p4 = scmp.eq.s32.totalorder %s1451_s15, 0 }
  0x1a   : > { %s2050_s21 = smov (!%p49_p1, %s48_s21), 2  ;;  %p71_p6 = scmp.ne.s32.totalorder %s1427_s9, %s1423_s30 }
  0x1b   : > { %s2052_s19 = smov (%p45_p3, %s2048_s19), 0  ;;  %p1586_p5 = por %p66_p4, %p65_p2 }
  0x1c   : > { %2013 = sst [smem:[#allocation20_spill]] %s2052_s19  ;;  %s1027_s24 = sshll.u32 %s2052_s19, 1 }
  0x1d   : > { %p72_p7 = scmp.eq.s32.totalorder %s1568_s16, 0  ;;  %s52_s25 = sadd.s32 %s1027_s24, %s2046_s18 }
  0x1e   : > { %s115_s26 = ssub.s32 %s1447_s14, %s2052_s19  ;;  %p53_p8 = scmp.lt.s32.totalorder %s52_s25, 2 }
  0x1f   : > { %p1597_p9 = por %p72_p7, %p71_p6  ;;  %p116_p10 = scmp.eq.s32.totalorder %s115_s26, 0 }
  0x20   : > { %s118_s17 = sadd.s32 1, %s1419_s29  ;;  %s2054_s25 = smov (!%p53_p8, %s52_s25), 2 }
  0x21   : > { %s1603_s13 = scalar_select %p116_p10, %s1419_s29, %s118_s17  }
  0x22   : > { %s55_s4 = ssub.s32 %s2050_s21, %s2054_s25  ;;  %p128_p11 = scmp.ne.s32.totalorder %s1419_s29, %s1415_s28 }
  0x23   : > { %2016 = sst [smem:[#allocation21_spill]] %s1603_s13  ;;  %p56_p12 = scmp.eq.s32.totalorder %s55_s4, 0 }
  0x24   : > { %p129_p13 = scmp.eq.s32.totalorder %s1568_s16, 3  ;;  %p134_p0 = scmp.ne.s32.totalorder %s1415_s28, %s1411_s27 }
  0x25   : > { %s2017_s30 = sadd.s32 4294967294, %s1451_s15   ;;  %p1031_p4 = scmp.ge.s32.totalorder %s1451_s15, 4 }
  0x26   : > { %p135_p1 = scmp.eq.s32.totalorder %s2017_s30, 3  ;;  %p1616_p2 = por %p129_p13, %p128_p11 }
  0x27   : > { %s1614_s3 = scalar_select %p56_p12, %s1431_s10, %s58_s22  }
  0x28   : > { %s2019_s24 = scalar_select %p1616_p2, 1, 0 }
  0x29   : > { %2018 = sst [smem:[#allocation22_spill]] %s1614_s3  ;;  %p1620_p3 = por %p135_p1, %p134_p0 }
  0x2a   : > { %307 = sbr.rel (%p1031_p4) target bundleno = 124 (0x7c), region = 16 }
  0x2b   : > { %s2020_s19 = scalar_select %p1620_p3, 1, 0 }
  0x2d   : > { %2021 = sst [smem:[#allocation23_spill]] %s2020_s19 }
  0x31   : > { %310 = sbr.rel (!%p1586_p5) target bundleno = 89 (0x59), region = 20  ;;  %s311_s4 = sand.u32 (%p1586_p5), 1, %s1431_s10  }
  0x32   : > { %s1034_s17 = sshll.u32 (%p1586_p5), %s2050_s21, 1  ;;  %s1032_s22 = sshll.u32 (%p1586_p5), %s311_s4, 4 }
  0x33   : > { %s321_s25 = ssub.s32 (%p1586_p5), 5, %s1034_s17  ;;  %s1632_s18 = scalar_lea.sflag (%p1586_p5), [#allocation3], %s311_s4 }
  0x34   : > { %p322_p6 = scmp.lt.s32.totalorder (%p1586_p5), %s321_s25, 2  ;;  %s315_s14 = scalar_lea.vmem (%p1586_p5), [#allocation2], %s1032_s22 }
  0x38   : > { %s2056_s25 = smov (!%p322_p6, %s321_s25), 2 }
  0x39   : > { %s1629_s26 = sshll.u32 %s2056_s25, 7 }
  0x3a   : > { %s326_s30 = ssub.s32 256, %s1629_s26 }
  0x3b   : > { %327 = vsyncadd %s1632_s18, %s326_s30  ;;  %p1036_p7 = scmp.ne.s32.totalorder %s1629_s26, 0  ;;  %s1061_s3 = sshll.u32 %s2050_s21, 8 }
  0x3c   : > { %s2022_s0 = sld [smem:[#allocation24_spill]]  ;;  %s332_s4 = sshll.u32 %s315_s14, 4  ;;  %s1642_s4 = int_to_ptr.vmem [resolvable:$true] %s332_s4 }
  0x42   : > { %s1640_s17 = scalar_lea.hbm %s2022_s0, %s1061_s3  ;;  %s1213_s19 = scalar_lea.hbm %s2022_s0, 640 }
  0x43   : > { %s1209_s22 = scalar_lea.hbm %s1640_s17, %s1629_s26  ;;  %p1214_p12 = scmp.lt.u32.totalorder %s1640_s17, %s2022_s0 }
  0x44   : > { %p1210_p8 = scmp.ne.s32.totalorder %s1640_s17, %s1209_s22  ;;  %p1215_p13 = scmp.lt.u32.totalorder %s1213_s19, %s1209_s22 }
  0x45   : > { %p1217_p1 = scmp.lt.u32.totalorder %s1209_s22, %s1640_s17 }
  0x46   : > { %p1211_p10 = pnand %p1210_p8, %p1036_p7  ;;  %p1216_p0 = por %p1215_p13, %p1214_p12 }
  0x48   : > { %p1212_p11 = pneg %p1211_p10  ;;  %p1218_p4 = por %p1217_p1, %p1216_p0 }
  0x4a   : > { %p1219_p6 = pnand %p1218_p4, %p1212_p11 }
  0x4c   : > { %1222 = shalt.err (!%p1219_p6)
}
  0x4d   : > { %s1223_s3 = scalar_lea.vmem %s1642_s4, %s1629_s26  ;;  %s1453_s13 = smov [#allocation2]  }
  0x4e   : > { %p1224_p8 = scmp.ne.s32.totalorder %s1642_s4, %s1223_s3  ;;  %s1227_s14 = sshll.u32 %s1453_s13, 4  ;;  %s1228_s14 = int_to_ptr.vmem [resolvable:$false] %s1227_s14 }
  0x4f   : > { %s1229_s27 = scalar_lea.vmem %s1228_s14, 512  ;;  %p1230_p2 = scmp.lt.s32.totalorder %s1642_s4, %s1228_s14 }
  0x50   : > { %p1225_p10 = pnand %p1224_p8, %p1036_p7  ;;  %p1231_p12 = scmp.lt.s32.totalorder %s1229_s27, %s1223_s3 }
  0x52   : > { %p1226_p3 = pneg %p1225_p10  ;;  %p1232_p13 = por %p1231_p12, %p1230_p2 }
  0x54   : > { %p1233_p0 = pnand %p1232_p13, %p1226_p3 }
  0x56   : > { %1236 = shalt.err (!%p1233_p0)
}
  0x57   : > { %s1454_s19 = smov 128   ;;  %s1455_s22 = smov 8  }
  0x58   : > { %338 = dma.hbm_to_vmem [thread:$0]  (%p1036_p7), %s1640_s17, %s1629_s26, %s1642_s4, %s1632_s18, %s1454_s19, %s1454_s19, %s1455_s22  }
  0x59 PF: > { %341 = sbr.rel (!%p1586_p5) target bundleno = 124 (0x7c), region = 24  ;;  %s342_s25 = sand.u32 (%p1586_p5), 1, %s1431_s10  }
  0x5a   : > { %s1042_s30 = sshll.u32 (%p1586_p5), %s2050_s21, 1  ;;  %s1040_s29 = sshll.u32 (%p1586_p5), %s342_s25, 4 }
  0x5b   : > { %s352_s3 = ssub.s32 (%p1586_p5), 5, %s1042_s30  ;;  %s1676_s27 = scalar_lea.sflag (%p1586_p5), [#allocation6], %s342_s25 }
  0x5c   : > { %p353_p2 = scmp.lt.s32.totalorder (%p1586_p5), %s352_s3, 2  ;;  %s346_s18 = scalar_lea.vmem (%p1586_p5), [#allocation5], %s1040_s29 }
  0x60   : > { %s2058_s3 = smov (!%p353_p2, %s352_s3), 2 }
  0x61   : > { %s1673_s13 = sshll.u32 %s2058_s3, 7 }
  0x62   : > { %s357_s14 = ssub.s32 256, %s1673_s13 }
  0x63   : > { %358 = vsyncadd %s1676_s27, %s357_s14  ;;  %p1044_p5 = scmp.ne.s32.totalorder %s1673_s13, 0  ;;  %s1062_s23 = sshll.u32 %s2050_s21, 8 }
  0x64   : > { %s1684_s4 = scalar_lea.hbm %s1987_s1, %s1062_s23  ;;  %s363_s19 = sshll.u32 %s346_s18, 4  ;;  %s1686_s19 = int_to_ptr.vmem [resolvable:$true] %s363_s19 }
  0x65   : > { %s1237_s22 = scalar_lea.hbm %s1684_s4, %s1673_s13  ;;  %s1241_s21 = scalar_lea.hbm %s1987_s1, 640 }
  0x66   : > { %p1238_p3 = scmp.ne.s32.totalorder %s1684_s4, %s1237_s22  ;;  %p1242_p1 = scmp.lt.u32.totalorder %s1684_s4, %s1987_s1 }
  0x67   : > { %p1243_p4 = scmp.lt.u32.totalorder %s1241_s21, %s1237_s22  ;;  %p1245_p8 = scmp.lt.u32.totalorder %s1237_s22, %s1684_s4 }
  0x68   : > { %p1239_p7 = pnand %p1238_p3, %p1044_p5 }
  0x69   : > { %p1244_p6 = por %p1243_p4, %p1242_p1 }
  0x6a   : > { %p1240_p11 = pneg %p1239_p7 }
  0x6b   : > { %p1246_p10 = por %p1245_p8, %p1244_p6 }
  0x6d   : > { %p1247_p12 = pnand %p1246_p10, %p1240_p11 }
  0x6f   : > { %1250 = shalt.err (!%p1247_p12)
}
  0x70   : > { %s1251_s14 = scalar_lea.vmem %s1686_s19, %s1673_s13  ;;  %s1456_s18 = smov [#allocation5]  }
  0x71   : > { %p1252_p13 = scmp.ne.s32.totalorder %s1686_s19, %s1251_s14  ;;  %s1255_s23 = sshll.u32 %s1456_s18, 4  ;;  %s1256_s23 = int_to_ptr.vmem [resolvable:$false] %s1255_s23 }
  0x72   : > { %s1257_s26 = scalar_lea.vmem %s1256_s23, 512  ;;  %p1258_p3 = scmp.lt.s32.totalorder %s1686_s19, %s1256_s23 }
  0x73   : > { %p1253_p0 = pnand %p1252_p13, %p1044_p5  ;;  %p1259_p7 = scmp.lt.s32.totalorder %s1257_s26, %s1251_s14 }
  0x75   : > { %p1254_p2 = pneg %p1253_p0  ;;  %p1260_p1 = por %p1259_p7, %p1258_p3 }
  0x77   : > { %p1261_p4 = pnand %p1260_p1, %p1254_p2 }
  0x79   : > { %1264 = shalt.err (!%p1261_p4)
}
  0x7a   : > { %s1457_s17 = smov 128   ;;  %s1458_s22 = smov 8  }
  0x7b   : > { %369 = dma.hbm_to_vmem [thread:$0]  (%p1044_p5), %s1684_s4, %s1673_s13, %s1686_s19, %s1676_s27, %s1457_s17, %s1457_s17, %s1458_s22  }
  0x7c PF: > { %p1048_p11 = scmp.ge.s32.totalorder %s1451_s15, 1  ;;  %p371_p6 = scmp.lt.s32.totalorder %s1451_s15, 5 }
  0x7e   : > { %p372_p8 = pnand %p1048_p11, %p371_p6 }
  0x7f   : > { %s377_s25 = sand.u32 (!%p372_p8), 1, %s1427_s9  }
  0x80   : > { %375 = sbr.rel (%p372_p8) target bundleno = 747 (0x2eb), region = 28  ;;  %s1049_s30 = sshll.u32 (!%p372_p8), %s377_s25, 4 }
  0x81   : > { %s378_s21 = scalar_lea.sflag (!%p372_p8), [#allocation3], %s377_s25  ;;  %s1716_s29 = scalar_lea.vmem (!%p372_p8), [#allocation2], %s1049_s30 }
  0x87   : > { %1394 = dma.done.wait (%p1597_p9), %s378_s21, 256  }
  0x88   : > { %1396 = vsyncadd (%p1597_p9), %s378_s21, 4294967040  ;;  %s387_s13 = scalar_lea.sflag [#allocation6], %s377_s25  ;;  %s1722_s27 = scalar_lea.vmem [#allocation5], %s1049_s30 }
  0x89   : > { %1398 = dma.done.wait (%p1597_p9), %s387_s13, 256  }
  0x8a   : > { %1400 = vsyncadd (%p1597_p9), %s387_s13, 4294967040  ;;  %s1729_s4 = sand.u32 1, %s1415_s28   ;;  %p465_p5 = scmp.lt.s32.totalorder %s1439_s12, 1 }
  0x8b   : > { %s1754_s0 = scalar_lea.vmem [#allocation7], %s1729_s4  ;;  %s1757_s3 = scalar_lea.vmem [#allocation8], %s1729_s4 }
  0x8c   : > { %s466_s19 = scalar_select %p465_p5, %s1439_s12, 1 }
  0x8d   : > { %s1760_s14 = scalar_lea.vmem [#allocation10], %s1729_s4  ;;  %p1051_p9 = scmp.ne.s32.totalorder %s1435_s11, 0 }
  0x8e   : > { %s1736_s18 = scalar_lea.vmem %s1991_s5, %s466_s19  ;;  %s1741_s20 = scalar_lea.vmem %s1992_s6, %s466_s19  ;;  %vm484_vm0 = vcmask (!%p1051_p9), 0   ;;  %v1459_v0 = vmov (!%p1051_p9), 0.0   ;;  %v1460_v1 = vmov (!%p1051_p9), -100.0   ;;  %v1461_v2 = vmov (!%p1051_p9), -inf  }
  0x8f   : > { %s1746_s25 = scalar_lea.vmem %s1993_s7, %s466_s19  ;;  %s1751_s13 = scalar_lea.vmem %s1994_s8, %s466_s19  ;;  %481 = vst [vmem:[%s1754_s0] sm:$0x1] (!%p1051_p9), %v1459_v0  ;;  %482 = vst [vmem:[%s1757_s3] sm:$0x1] (!%p1051_p9), %v1459_v0 }
  0x90   : > { %480 = sbr.rel (%p1051_p9) target bundleno = 151 (0x97), region = 40  ;;  %483 = vst [vmem:[%s1760_s14] sm:$0x1] (!%p1051_p9), %v1460_v1  ;;  %485 = vst.msk [vmem:[%s1736_s18] sm:$0x1] (!%p1051_p9), %vm484_vm0, %v1461_v2 }
  0x91   : > { %486 = vst.msk [vmem:[%s1741_s20] sm:$0x1] (!%p1051_p9), %vm484_vm0, %v1461_v2  ;;  %487 = vst.msk [vmem:[%s1746_s25] sm:$0x1] (!%p1051_p9), %vm484_vm0, %v1459_v0 }
  0x92   : > { %488 = vst.msk [vmem:[%s1751_s13] sm:$0x1] (!%p1051_p9), %vm484_vm0, %v1459_v0 }
  0x97 PF: > { %s1052_s19 = sshll.u32 %s1439_s12, 1  ;;  %v500_v3 = vlaneseq  ;;  %v491_v4 = vld [vmem:[%s1722_s27] sm:$0xff]  ;;  %v492_v8 = vld [vmem:[%s1722_s27 + $0x8] sm:$0xff]  ;;  %v1462_v19 = vmov 0   ;;  %v1463_v26 = vmov 0.0   ;;  %vm634_vm13 = vcmask 0  }
  0x98   : > { %s498_s23 = sadd.s32 %s1435_s11, %s1052_s19  ;;  %v489_v5 = vld [vmem:[%s1716_s29] sm:$0xff]  ;;  %vm495_vm1 = vcmp.eq.f32.partialorder %v491_v4, 0.0  ;;  %v490_v10 = vld [vmem:[%s1716_s29 + $0x8] sm:$0xff]  ;;  %vm493_vm2 = vcmp.gt.f32.partialorder %v491_v4, 0.0  ;;  %vm496_vm4 = vcmp.eq.f32.partialorder %v492_v8, 0.0  ;;  %vm494_vm6 = vcmp.gt.f32.partialorder %v492_v8, 0.0  ;;  %1180 = vset.pattern.permute.xlu1 %v1462_v19  ;;  %1179 = vset.pattern.permute.xlu0 %v1462_v19 }
  0x99   : > { %s1053_s26 = sshll.u32 %s498_s23, 4  ;;  %v501_v6 = vshrl.u32 %v500_v3, 7  ;;  %v516_v12 = vmul.f32 -0.25, %v489_v5  ;;  %v517_v14 = vmul.f32 -0.25, %v490_v10  ;;  %v552_v44 = vld [vmem:[%s1741_s20] sm:$0x1] }
  0x9a   : > { %v503_v7 = vstv %s1053_s26  ;;  %v551_v47 = vld [vmem:[%s1736_s18] sm:$0x1]  ;;  %s1826_s11 = sshll.u32 %s1439_s12, 4  ;;  %s757_s29 = sshll.u32 %s1754_s0, 4  ;;  %s1840_s29 = int_to_ptr.vmem [resolvable:$true] %s757_s29 }
  0x9b   : > { %v504_v9 = vadd.s32 %v503_v7, %v501_v6  ;;  %v502_v11 = vadd.s32 8, %v501_v6  ;;  %v1798_v46 = vsub.s32 0, %v501_v6  ;;  %v710_v50 = vld [vmem:[%s1751_s13] sm:$0x1]  ;;  %s1838_s17 = scalar_lea.hbm %s1988_s2, %s1826_s11  ;;  %s725_s26 = scalar_lea.sflag [#allocation4], %s1729_s4 }
  0x9c   : > { %s1265_s12 = scalar_lea.vmem %s1840_s29, 16  ;;  %p2025_p12 = scmp.ne.s32.totalorder %s2019_s24, 0 }
  0x9d   : > { %vm506_vm3 = vcmp.lt.s32.totalorder %v504_v9, 40  ;;  %v505_v13 = vadd.s32 %v503_v7, %v502_v11  ;;  %p1266_p10 = scmp.ne.s32.totalorder %s1840_s29, %s1265_s12 }
  0x9e   : > { %vm514_vm5 = vmand %vm495_vm1, %vm506_vm3 }
  0x9f   : > { %v1776_v15 = vsel %vm514_vm5, %v489_v5, -100.0  ;;  %vm512_vm7 = vmand %vm493_vm2, %vm506_vm3  ;;  %vm507_vm8 = vcmp.lt.s32.totalorder %v505_v13, 40  ;;  %p1267_p13 = pnand %p1266_p10, %p2025_p12 }
  0xa0   : > { %540 = vmax.xlane.f32.xlu1 %v1776_v15  ;;  %v1779_v16 = vsel %vm512_vm7, %v516_v12, -100.0  ;;  %vm515_vm9 = vmand %vm496_vm4, %vm507_vm8 }
  0xa1   : > { %529 = vmax.xlane.f32.xlu0 %v1779_v16  ;;  %v521_v17 = vsel %vm515_vm9, %v490_v10, -100.0  ;;  %vm513_vm10 = vmand %vm494_vm6, %vm507_vm8  ;;  %p1268_p0 = pneg %p1267_p13 }
  0xa2   : > { %v1782_v18 = vsel %vm513_vm10, %v517_v14, -100.0 }
  0xa4   : > { %542 = vmax.xlane.f32.xlu1 %v521_v17 }
  0xa5   : > { %531 = vmax.xlane.f32.xlu0 %v1782_v18 }
 0x12d   : > { %v541_v20 = vpop.xlane.xlu1 %540 }
 0x12e   : > { %v1785_v21 = vpop.xlane.xlu0 %529 }
 0x12f   : > { %vm693_vm11 = vcmp.gt.f32.partialorder %v1785_v21, -99.0 }
 0x130   : > { %v1054_v27 = vsel %vm693_vm11, 1.0, %v1463_v26 }
 0x131   : > { %v543_v22 = vpop.xlane.xlu1 %542 }
 0x132   : > { %v544_v23 = vmax.f32 %v541_v20, %v543_v22  ;;  %v1788_v24 = vpop.xlane.xlu0 %531 }
 0x133   : > { %v533_v25 = vmax.f32 %v1785_v21, %v1788_v24  ;;  %vm694_vm12 = vcmp.gt.f32.partialorder %v1788_v24, -99.0 }
 0x134   : > { %v545_v28 = vrot.slane %v544_v23, 4  ;;  %v1055_v29 = vsel %vm694_vm12, 1.0, %v1463_v26  ;;  %v631_v26 = vld [vmem:[%s1760_s14] sm:$0x1] }
 0x135   : > { %v534_v30 = vrot.slane %v533_v25, 4  ;;  %v715_v31 = vadd.f32 %v1055_v29, %v1054_v27 }
 0x136   : > { %v546_v32 = vmax.f32 %v544_v23, %v545_v28 }
 0x137   : > { %v535_v33 = vmax.f32 %v533_v25, %v534_v30  ;;  %v716_v34 = vrot.slane %v715_v31, 4 }
 0x138   : > { %v547_v35 = vrot.slane %v546_v32, 2 }
 0x139   : > { %v536_v36 = vrot.slane %v535_v33, 2  ;;  %v717_v37 = vadd.f32 %v716_v34, %v715_v31 }
 0x13a   : > { %v548_v38 = vmax.f32 %v546_v32, %v547_v35 }
 0x13b   : > { %v537_v39 = vmax.f32 %v535_v33, %v536_v36  ;;  %v718_v40 = vrot.slane %v717_v37, 2 }
 0x13c   : > { %v549_v41 = vrot.slane %v548_v38, 1 }
 0x13d   : > { %v538_v42 = vrot.slane %v537_v39, 1  ;;  %v719_v43 = vadd.f32 %v718_v40, %v717_v37 }
 0x13e   : > { %v550_v45 = vmax.f32 %v548_v38, %v549_v41 }
 0x13f   : > { %v539_v48 = vmax.f32 %v537_v39, %v538_v42  ;;  %v720_v49 = vrot.slane %v719_v43, 1  ;;  %v591_v39 = vld [vmem:[%s1754_s0] sm:$0x1] }
 0x140   : > { %v554_v51 = vmax.f32 %v552_v44, %v550_v45 }
 0x141   : > { %v721_v52 = vadd.f32 %v720_v49, %v719_v43  ;;  %v553_v53 = vmax.f32 %v551_v47, %v539_v48  ;;  %v611_v49 = vld [vmem:[%s1757_s3] sm:$0x1] }
 0x142   : > { %v1803_v54 = vrot.slane %v554_v51, %v1798_v46  ;;  %636 = vst.msk [vmem:[%s1741_s20] sm:$0x1] %vm634_vm13, %v554_v51  ;;  %v558_v55 = vsub.f32 %v552_v44, %v554_v51  ;;  %s1464_s20 = smov [#allocation7]  }
 0x143   : > { %v722_v56 = vadd.f32 %v721_v52, %v710_v50  ;;  %v1808_v57 = vrot.slane %v553_v53, %v1798_v46  ;;  %635 = vst.msk [vmem:[%s1736_s18] sm:$0x1] %vm634_vm13, %v553_v53  ;;  %v555_v58 = vsub.f32 %v551_v47, %v553_v53  ;;  %s770_s18 = sshll.u32 %s1757_s3, 4  ;;  %s1269_s27 = sshll.u32 %s1464_s20, 4  ;;  %s1850_s18 = int_to_ptr.vmem [resolvable:$true] %s770_s18  ;;  %s1270_s27 = int_to_ptr.vmem [resolvable:$false] %s1269_s27 }
 0x144   : > { %582 = vperm.xlu1 %1180, %v1803_v54   ;;  %v559_v12 = vmul.f32 1.442695, %v558_v55  ;;  %s1271_s22 = scalar_lea.vmem %s1270_s27, 32  ;;  %p1272_p2 = scmp.lt.s32.totalorder %s1840_s29, %s1270_s27 }
 0x145   : > { %723 = vst.msk [vmem:[%s1751_s13] sm:$0x1] %vm634_vm13, %v722_v56  ;;  %567 = vperm.xlu0 %1179, %v1808_v57   ;;  %v556_v11 = vmul.f32 1.442695, %v555_v58  ;;  %s2023_s13 = sld [smem:[#allocation25_spill]]  ;;  %p1273_p3 = scmp.lt.s32.totalorder %s1271_s22, %s1265_s12 }
 0x147   : > { %p1274_p7 = por %p1273_p3, %p1272_p2 }
 0x149   : > { %p1275_p1 = pnand %p1274_p7, %p1268_p0 }
 0x14b   : > { %s2024_s19 = smov %s2023_s13  ;;  %s1848_s23 = scalar_lea.hbm %s2023_s13, %s1826_s11 }
 0x1c3   : > { %v583_v59 = vpop.permute.xlu1 %582 }
 0x1c4   : > { %v585_v60 = vsub.f32 %v1776_v15, %v583_v59  ;;  %v586_v61 = vsub.f32 %v521_v17, %v583_v59  ;;  %v568_v62 = vpop.permute.xlu0 %567  ;;  %v522_v15 = vmax.f32 %v1779_v16, %v1782_v18 }
 0x1c5   : > { %v570_v63 = vsub.f32 %v1779_v16, %v568_v62  ;;  %v571_v0 = vsub.f32 %v1782_v18, %v568_v62 }
 0x1c6   : > { %v587_v1 = vmul.f32 1.442695, %v585_v60  ;;  %v589_v2 = vmul.f32 1.442695, %v586_v61  ;;  %v523_v17 = vrot.slane %v522_v15, 4 }
 0x1c7   : > { %v572_v3 = vmul.f32 1.442695, %v570_v63  ;;  %v574_v4 = vmul.f32 1.442695, %v571_v0 }
 0x1c8   : > { %1181 = vpow2.f32 %v587_v1  ;;  %v524_v19 = vmax.f32 %v522_v15, %v523_v17 }
 0x1c9   : > { %1183 = vpow2.f32 %v589_v2 }
 0x1ca   : > { %1185 = vpow2.f32 %v572_v3  ;;  %v525_v20 = vrot.slane %v524_v19, 2 }
 0x1cb   : > { %1187 = vpow2.f32 %v574_v4 }
 0x1cc   : > { %1189 = vpow2.f32 %v556_v11  ;;  %v526_v22 = vmax.f32 %v524_v19, %v525_v20 }
 0x1cd   : > { %1191 = vpow2.f32 %v559_v12 }
 0x1ce   : > { %v527_v23 = vrot.slane %v526_v22, 1 }
 0x1d0   : > { %v528_v25 = vmax.f32 %v526_v22, %v527_v23 }
 0x1d2   : > { %v1182_v5 = vpop.eup %1181  ;;  %v632_v27 = vmax.f32 %v631_v26, %v528_v25 }
 0x1d3   : > { %v1184_v6 = vpop.eup %1183 }
 0x1d4   : > { %v1186_v7 = vpop.eup %1185  ;;  %v622_v8 = vadd.f32 %v1184_v6, %v1182_v5  ;;  %633 = vst [vmem:[%s1760_s14] sm:$0x1] %v632_v27 }
 0x1d5   : > { %v1188_v9 = vpop.eup %1187  ;;  %637 = vadd.xlane.f32.xlu1 %v1186_v7 }
 0x1d6   : > { %639 = vadd.xlane.f32.xlu0 %v1188_v9  ;;  %v602_v10 = vadd.f32 %v1188_v9, %v1186_v7  ;;  %v1190_v13 = vpop.eup %1189  ;;  %v623_v29 = vrot.slane %v622_v8, 4 }
 0x1d7   : > { %v1192_v14 = vpop.eup %1191 }
 0x1d8   : > { %v603_v28 = vrot.slane %v602_v10, 4  ;;  %v624_v31 = vadd.f32 %v623_v29, %v622_v8 }
 0x1d9   : > { %641 = vadd.xlane.f32.xlu1 %v1182_v5 }
 0x1da   : > { %v604_v30 = vadd.f32 %v603_v28, %v602_v10  ;;  %v625_v16 = vrot.slane %v624_v31, 2 }
 0x1dc   : > { %v605_v33 = vrot.slane %v604_v30, 2  ;;  %v626_v36 = vadd.f32 %v625_v16, %v624_v31 }
 0x1dd   : > { %643 = vadd.xlane.f32.xlu1 %v1184_v6 }
 0x1de   : > { %v606_v35 = vadd.f32 %v605_v33, %v604_v30  ;;  %v627_v43 = vrot.slane %v626_v36, 1 }
 0x1e0   : > { %v607_v38 = vrot.slane %v606_v35, 1  ;;  %v628_v58 = vadd.f32 %v627_v43, %v626_v36 }
 0x1e2   : > { %v608_v47 = vadd.f32 %v607_v38, %v606_v35 }
 0x1ec   : > { %594 = vperm.xlu0 %1179, %v1190_v13  }
 0x1ee   : > { %614 = vperm.xlu1 %1180, %v1192_v14  }
 0x262   : > { %v638_v32 = vpop.xlane.xlu1 %637 }
 0x263   : > { %v640_v34 = vpop.xlane.xlu0 %639  ;;  %1193 = vlog2.f32 %v638_v32 }
 0x264   : > { %1195 = vlog2.f32 %v640_v34 }
 0x266   : > { %v642_v18 = vpop.xlane.xlu1 %641 }
 0x267   : > { %1197 = vlog2.f32 %v642_v18 }
 0x26a   : > { %v644_v37 = vpop.xlane.xlu1 %643 }
 0x26b   : > { %1199 = vlog2.f32 %v644_v37  ;;  %v595_v40 = vpop.permute.xlu0 %594 }
 0x26c   : > { %v600_v41 = vrot.slane %v595_v40, %v1798_v46 }
 0x26d   : > { %v1194_v42 = vpop.eup %1193 }
 0x26e   : > { %v1196_v44 = vpop.eup %1195  ;;  %v646_v45 = vmul.f32 0.6931472, %v1194_v42  ;;  %v601_v48 = vmul.f32 %v600_v41, %v591_v39  ;;  %v615_v50 = vpop.permute.xlu1 %614 }
 0x26f   : > { %v620_v51 = vrot.slane %v615_v50, %v1798_v46  ;;  %v648_v52 = vmul.f32 0.6931472, %v1196_v44 }
 0x270   : > { %v650_v53 = vadd.f32 %v646_v45, %v1808_v57  ;;  %v609_v55 = vadd.f32 %v608_v47, %v601_v48 }
 0x271   : > { %v1198_v56 = vpop.eup %1197  ;;  %v621_v59 = vmul.f32 %v620_v51, %v611_v49 }
 0x272   : > { %v655_v46 = vmul.f32 0.6931472, %v1198_v56  ;;  %610 = vst [vmem:[%s1754_s0] sm:$0x1] %v609_v55 }
 0x273   : > { %v629_v60 = vadd.f32 %v628_v58, %v621_v59 }
 0x274   : > { %1278 = shalt.err (!%p1275_p1)
}
 0x275   : > { %s1279_s0 = scalar_lea.hbm %s1838_s17, 16  ;;  %s1283_s21 = scalar_lea.hbm %s1988_s2, 32 }
 0x276   : > { %p1280_p4 = scmp.ne.s32.totalorder %s1838_s17, %s1279_s0  ;;  %p1284_p8 = scmp.lt.u32.totalorder %s1838_s17, %s1988_s2 }
 0x277   : > { %p1285_p5 = scmp.lt.u32.totalorder %s1283_s21, %s1279_s0  ;;  %p1287_p10 = scmp.lt.u32.totalorder %s1279_s0, %s1838_s17 }
 0x278   : > { %p1281_p11 = pnand %p1280_p4, %p2025_p12 }
 0x279   : > { %p1286_p9 = por %p1285_p5, %p1284_p8 }
 0x27a   : > { %p1282_p6 = pneg %p1281_p11 }
 0x27b   : > { %p1288_p13 = por %p1287_p10, %p1286_p9 }
 0x27d   : > { %p1289_p0 = pnand %p1288_p13, %p1282_p6 }
 0x27f   : > { %1292 = shalt.err (!%p1289_p0)
}
 0x280   : > { %1065 = dma.vmem_to_hbm [thread:$0]  (%p2025_p12), %s1840_s29, 16, %s1838_s17, %s725_s26   ;;  %v651_v61 = vadd.f32 %v648_v52, %v1808_v57  ;;  %v652_v62 = vmul.f32 4.0, %v650_v53  ;;  %v659_v63 = vadd.f32 %v655_v46, %v1803_v54  ;;  %v1200_v0 = vpop.eup %1199  ;;  %630 = vst [vmem:[%s1757_s3] sm:$0x1] %v629_v60 }
 0x281   : > { %s2026_s20 = sld [smem:[#allocation26_spill]]  ;;  %s2027_s4 = sshll.u32 %s1760_s14, 4  ;;  %v657_v2 = vmul.f32 0.6931472, %v1200_v0  ;;  %s1884_s4 = int_to_ptr.vmem [resolvable:$true] %s2027_s4 }
 0x282   : > { %v1887_v1 = vadd.f32 %v659_v63, %v652_v62  ;;  %s2028_s29 = sand.u32 1, %s1568_s16   ;;  %s1293_s26 = scalar_lea.vmem %s1850_s18, 16 }
 0x283   : > { %s1891_s17 = scalar_lea.sflag [#allocation9], %s2028_s29  ;;  %p1294_p2 = scmp.ne.s32.totalorder %s1850_s18, %s1293_s26 }
 0x284   : > { %s1465_s30 = smov [#allocation8]  }
 0x285   : > { %p1295_p3 = pnand %p1294_p2, %p2025_p12  ;;  %s1297_s21 = sshll.u32 %s1465_s30, 4  ;;  %s1298_s21 = int_to_ptr.vmem [resolvable:$false] %s1297_s21 }
 0x286   : > { %p1300_p1 = scmp.lt.s32.totalorder %s1850_s18, %s1298_s21 }
 0x287   : > { %s1880_s0 = scalar_lea.hbm %s2026_s20, %s1826_s11  ;;  %p1296_p7 = pneg %p1295_p3 }
 0x288   : > { %s1299_s11 = scalar_lea.vmem %s1298_s21, 32 }
 0x289   : > { %p1301_p4 = scmp.lt.s32.totalorder %s1299_s11, %s1293_s26 }
 0x28b   : > { %p1302_p11 = por %p1301_p4, %p1300_p1 }
 0x28d   : > { %p1303_p6 = pnand %p1302_p11, %p1296_p7 }
 0x28f   : > { %1306 = shalt.err (!%p1303_p6)
}
 0x290   : > { %s1307_s16 = scalar_lea.hbm %s1848_s23, 16  ;;  %s1311_s13 = scalar_lea.hbm %s2024_s19, 32 }
 0x291   : > { %p1308_p8 = scmp.ne.s32.totalorder %s1848_s23, %s1307_s16  ;;  %p1312_p10 = scmp.lt.u32.totalorder %s1848_s23, %s2024_s19 }
 0x292   : > { %p1313_p13 = scmp.lt.u32.totalorder %s1311_s13, %s1307_s16  ;;  %p1315_p2 = scmp.lt.u32.totalorder %s1307_s16, %s1848_s23 }
 0x293   : > { %p1309_p5 = pnand %p1308_p8, %p2025_p12 }
 0x294   : > { %p1314_p0 = por %p1313_p13, %p1312_p10 }
 0x295   : > { %p1310_p9 = pneg %p1309_p5 }
 0x296   : > { %p1316_p3 = por %p1315_p2, %p1314_p0 }
 0x298   : > { %p1317_p7 = pnand %p1316_p3, %p1310_p9 }
 0x29a   : > { %1320 = shalt.err (!%p1317_p7)
}
 0x29b   : > { %1066 = dma.vmem_to_hbm [thread:$0]  (%p2025_p12), %s1850_s18, 16, %s1848_s23, %s1891_s17  }
 0x29c   : > { %s1321_s12 = scalar_lea.vmem %s1884_s4, 16  ;;  %s1466_s29 = smov [#allocation10]  }
 0x29d   : > { %p1322_p1 = scmp.ne.s32.totalorder %s1884_s4, %s1321_s12  ;;  %s1325_s26 = sshll.u32 %s1466_s29, 4  ;;  %s1326_s26 = int_to_ptr.vmem [resolvable:$false] %s1325_s26 }
 0x29e   : > { %s1327_s30 = scalar_lea.vmem %s1326_s26, 32  ;;  %p1328_p6 = scmp.lt.s32.totalorder %s1884_s4, %s1326_s26 }
 0x29f   : > { %p1323_p4 = pnand %p1322_p1, %p2025_p12  ;;  %p1329_p8 = scmp.lt.s32.totalorder %s1327_s30, %s1321_s12 }
 0x2a1   : > { %p1324_p11 = pneg %p1323_p4  ;;  %p1330_p5 = por %p1329_p8, %p1328_p6 }
 0x2a3   : > { %p1331_p9 = pnand %p1330_p5, %p1324_p11 }
 0x2a5   : > { %1334 = shalt.err (!%p1331_p9)
}
 0x2a6   : > { %s1335_s18 = scalar_lea.hbm %s1880_s0, 16  ;;  %s1339_s11 = scalar_lea.hbm %s2026_s20, 32 }
 0x2a7   : > { %p1336_p10 = scmp.ne.s32.totalorder %s1880_s0, %s1335_s18  ;;  %p1340_p2 = scmp.lt.u32.totalorder %s1880_s0, %s2026_s20 }
 0x2a8   : > { %p1341_p3 = scmp.lt.u32.totalorder %s1339_s11, %s1335_s18  ;;  %p1343_p1 = scmp.lt.u32.totalorder %s1335_s18, %s1880_s0 }
 0x2a9   : > { %p1337_p13 = pnand %p1336_p10, %p2025_p12 }
 0x2aa   : > { %p1342_p7 = por %p1341_p3, %p1340_p2 }
 0x2ab   : > { %p1338_p0 = pneg %p1337_p13 }
 0x2ac   : > { %p1344_p4 = por %p1343_p1, %p1342_p7 }
 0x2ae   : > { %p1345_p11 = pnand %p1344_p4, %p1338_p0 }
 0x2b0   : > { %1348 = shalt.err (!%p1345_p11)
}
 0x2b1   : > { %1067 = dma.vmem_to_hbm [thread:$0]  (%p2025_p12), %s1884_s4, 16, %s1880_s0, %s1891_s17   ;;  %v653_v57 = vmul.f32 4.0, %v651_v61  ;;  %v665_v3 = vand.u32 2147483647, %v1887_v1  ;;  %v660_v4 = vadd.f32 %v657_v2, %v1803_v54  ;;  %v663_v26 = vmax.f32 %v1887_v1, 0.0 }
 0x2b2   : > { %vm698_vm0 = vcmask 7168   ;;  %v695_v44 = vld [vmem:[%s1746_s25] sm:$0x1] }
 0x2b3   : > { %v667_v5 = vsub.f32 0.0, %v665_v3  ;;  %v662_v6 = vadd.f32 %v660_v4, %v653_v57 }
 0x2b5   : > { %v669_v7 = vmul.f32 1.442695, %v667_v5  ;;  %v666_v8 = vand.u32 2147483647, %v662_v6  ;;  %v664_v33 = vmax.f32 %v662_v6, 0.0 }
 0x2b7   : > { %1201 = vpow2.f32 %v669_v7  ;;  %v668_v9 = vsub.f32 0.0, %v666_v8 }
 0x2b9   : > { %v671_v10 = vmul.f32 1.442695, %v668_v9 }
 0x2bb   : > { %1203 = vpow2.f32 %v671_v10 }
 0x2c1   : > { %v1202_v11 = vpop.eup %1201 }
 0x2c2   : > { %v673_v12 = vadd.f32 1.0, %v1202_v11  ;;  %v676_v15 = vmul.f32 -0.5, %v1202_v11  ;;  %v679_v20 = vand.u32 2147483647, %v1202_v11 }
 0x2c4   : > { %1205 = vlog2.f32 %v673_v12  ;;  %v677_v17 = vadd.f32 1.0, %v676_v15  ;;  %vm680_vm14 = vcmp.lt.f32.partialorder %v679_v20, 0.0004427343 }
 0x2c5   : > { %v1204_v13 = vpop.eup %1203 }
 0x2c6   : > { %v682_v14 = vadd.f32 1.0, %v1204_v13  ;;  %v685_v19 = vmul.f32 -0.5, %v1204_v13  ;;  %v678_v23 = vmul.f32 %v1202_v11, %v677_v17  ;;  %v688_v27 = vand.u32 2147483647, %v1204_v13 }
 0x2c8   : > { %1207 = vlog2.f32 %v682_v14  ;;  %v686_v25 = vadd.f32 1.0, %v685_v19  ;;  %vm689_vm15 = vcmp.lt.f32.partialorder %v688_v27, 0.0004427343 }
 0x2ca   : > { %v687_v32 = vmul.f32 %v1204_v13, %v686_v25 }
 0x2ce   : > { %v1206_v22 = vpop.eup %1205 }
 0x2cf   : > { %v675_v54 = vmul.f32 0.6931472, %v1206_v22 }
 0x2d1   : > { %v681_v28 = vsel %vm680_vm14, %v678_v23, %v675_v54 }
 0x2d2   : > { %v1208_v29 = vpop.eup %1207  ;;  %v691_v30 = vadd.f32 %v681_v28, %v663_v26 }
 0x2d3   : > { %v684_v31 = vmul.f32 0.6931472, %v1208_v29 }
 0x2d4   : > { %v696_v16 = vsel %vm693_vm11, %v691_v30, 0.0 }
 0x2d5   : > { %v690_v34 = vsel %vm689_vm15, %v687_v32, %v684_v31  ;;  %v699_v36 = vsel %vm698_vm0, %v696_v16, 0.0 }
 0x2d6   : > { %v692_v18 = vadd.f32 %v690_v34, %v664_v33 }
 0x2d8   : > { %v697_v35 = vsel %vm694_vm12, %v692_v18, 0.0 }
 0x2d9   : > { %v700_v37 = vsel %vm698_vm0, %v697_v35, 0.0 }
 0x2da   : > { %v701_v38 = vadd.f32 %v700_v37, %v699_v36 }
 0x2dc   : > { %v702_v39 = vrot.slane %v701_v38, 4 }
 0x2de   : > { %v703_v40 = vadd.f32 %v702_v39, %v701_v38 }
 0x2e0   : > { %v704_v41 = vrot.slane %v703_v40, 2 }
 0x2e2   : > { %v705_v42 = vadd.f32 %v704_v41, %v703_v40 }
 0x2e4   : > { %v706_v43 = vrot.slane %v705_v42, 1 }
 0x2e6   : > { %v707_v45 = vadd.f32 %v706_v43, %v705_v42 }
 0x2e8   : > { %v708_v47 = vadd.f32 %v707_v45, %v695_v44 }
 0x2ea   : > { %709 = vst.msk [vmem:[%s1746_s25] sm:$0x1] %vm634_vm13, %v708_v47 }
 0x2eb PF: > { %s2029_s24 = sld [smem:[#allocation15_spill]]  ;;  %s2030_s0 = sld [smem:[#allocation23_spill]] }
 0x2ec   : > { %p1081_p12 = scmp.ge.s32.totalorder %s1451_s15, 2 }
 0x2f1   : > { %s807_s4 = sand.u32 1, %s2029_s24   ;;  %p2031_p6 = scmp.ne.s32.totalorder %s2030_s0, 0 }
 0x2f2   : > { %s808_s17 = scalar_lea.sflag [#allocation4], %s807_s4 }
 0x2f3   : > { %p1072_p8 = pnand %p1081_p12, %p2031_p6 }
 0x2f5   : > { %1402 = dma.done.wait (!%p1072_p8), %s808_s17, 16  }
 0x2f6   : > { %1404 = vsyncadd (!%p1072_p8), %s808_s17, 4294967280  ;;  %s2032_s14 = sadd.s32 4294967294, %s1451_s15  }
 0x2f7   : > { %s815_s13 = sand.u32 1, %s2032_s14  }
 0x2f8   : > { %s816_s27 = scalar_lea.sflag [#allocation9], %s815_s13 }
 0x2f9   : > { %1406 = dma.done.wait (!%p1072_p8), %s816_s27, 32  }
 0x2fa   : > { %1408 = vsyncadd (!%p1072_p8), %s816_s27, 4294967264  ;;  %s31_s15 = sadd.s32 1, %s1451_s15   ;;  %s2033_s25 = sld [smem:[#allocation16_spill]] }
 0x2fb   : > { %p28_p5 = scmp.ge.s32.totalorder %s31_s15, 6   ;;  %s2034_s29 = sld [smem:[#allocation21_spill]] }
 0x2fc   : > { %s2035_s22 = sld [smem:[#allocation22_spill]]  ;;  %s2036_s11 = sld [smem:[#allocation17_spill]] }
 0x2fd   : > { %s2037_s12 = sld [smem:[#allocation18_spill]]  ;;  %s2038_s13 = sld [smem:[#allocation19_spill]] }
 0x2fe   : > { %s2039_s14 = sld [smem:[#allocation20_spill]]  ;;  %s2040_s27 = smov %s1415_s28 }
 0x2ff   : > { %s2042_s30 = smov %s1427_s9  ;;  %s2043_s9 = smov %s1431_s10 }
 0x300   : > { %s2041_s28 = smov %s2033_s25  ;;  %30 = sbr.rel (!%p28_p5) target bundleno = 17 (0x11), region = 170 }
 0x302   : > { %s2044_s10 = smov %s2035_s22 }
 0x307   :  { %852 = vsyncpa [#allocation3], 1 }
 0x308   :  { %854 = vsyncpa [#allocation3 + $0x1], 1 }
 0x309   :  { %855 = vsyncpa [#allocation6], 1 }
 0x30a   :  { %857 = vsyncpa [#allocation6 + $0x1], 1 }
 0x30b   :  { %858 = vsyncpa [#allocation4], 1 }
 0x30c   :  { %860 = vsyncpa [#allocation4 + $0x1], 1 }
 0x30d   :  { %861 = vsyncpa [#allocation9], 1 }
 0x30e   :  { %863 = vsyncpa [#allocation9 + $0x1], 1 }

</bundles_post_ra>
